<compile_context>
chip_gen: v5e
topology: v5e:2x2
jax: 0.10.0
libtpu: 0.0.40
codegen_flags: <defaults>
</compile_context>

<pallas_src>
import functools

import jax
import jax.numpy as jnp
from jax import lax
from jax.experimental import pallas as pl
from jax.experimental.pallas import tpu as pltpu


def _pick_unroll(num_iter, slab_vregs):
    # Unrolling multiplies peak live temporaries the scheduler interleaves; at
    # 64 vregs a big slab flips the regime to spill-bound, so back off.
    if slab_vregs <= 4:
        return True if num_iter <= 8 else 4
    if slab_vregs <= 16:
        return 2
    return 1


def _jacobi_kernel_flat(f_ref, u0_ref, o_ref, *, h, num_iter, W, H):
    """Lane-packed path.  Block shape (Bt, W*H): batches on sublanes,
    flattened (W,H) image on lanes."""
    f = f_ref[...]
    u = u0_ref[...]
    L = W * H
    shape = f.shape

    zero = jnp.float32(0.0)
    quarter = jnp.float32(0.25)
    f_term = jnp.float32(h * h / 4.0) * f            # hoisted (h^2/4) * f

    # Flat lane index 0..L-1 (identical in every batch row).
    idx = lax.broadcasted_iota(jnp.int32, shape, 1)

    def make_masks():
        rh = idx % H
        return (idx < H,           # rw == 0       (first row)
                idx >= L - H,      # rw == W - 1   (last row)
                rh == 0,           # rh == 0       (first column)
                rh == H - 1)       # rh == H - 1   (Dirichlet column)

    slab_vregs = -(-shape[0] // 8) * -(-L // 128)
    hoist_masks = slab_vregs <= 16
    hoisted = make_masks() if hoist_masks else None

    def step(_, u):
        m_w0, m_wl, m_h0, m_db = hoisted if hoist_masks else make_masks()
        # 3x3 cross conv with zero padding.  Rolls act per sublane row, so
        # batches never mix; circular wrap-around lands exactly on the masked
        # positions (complements of the boundary-update masks -> 4 masks).
        north = jnp.where(m_w0, zero, pltpu.roll(u, H, 1))        # u[i-1, j]
        south = jnp.where(m_wl, zero, pltpu.roll(u, L - H, 1))    # u[i+1, j]
        west = jnp.where(m_h0, zero, pltpu.roll(u, 1, 1))         # u[i, j-1]
        east = jnp.where(m_db, zero, pltpu.roll(u, L - 1, 1))     # u[i, j+1]
        v = quarter * (north + south + west + east) - f_term

        # update_DB: u[..., -1] = 0
        v = jnp.where(m_db, zero, v)
        # update_NB, exactly in the reference in-place order (each fix reads
        # the already-updated slab).
        v = jnp.where(m_w0, pltpu.roll(v, L - H, 1), v)   # row 0    <- row 1
        v = jnp.where(m_h0, pltpu.roll(v, L - 1, 1), v)   # col 0    <- col 1
        v = jnp.where(m_wl, pltpu.roll(v, H, 1), v)       # row W-1  <- row W-2
        return v

    u = lax.fori_loop(0, num_iter, step, u,
                      unroll=_pick_unroll(num_iter, slab_vregs))
    o_ref[...] = u.astype(o_ref.dtype)


def _jacobi_kernel_2d(f_ref, u0_ref, o_ref, *, h, num_iter):
    """Already-lane-dense path (H >= 128).  Block shape (1, W, H): one batch
    per grid step, W on sublanes, H on lanes, no transposes anywhere."""
    f = f_ref[0]
    u = u0_ref[0]
    W, H = f.shape
    shape = f.shape

    zero = jnp.float32(0.0)
    quarter = jnp.float32(0.25)
    f_term = jnp.float32(h * h / 4.0) * f

    rw = lax.broadcasted_iota(jnp.int32, shape, 0)
    rh = lax.broadcasted_iota(jnp.int32, shape, 1)

    def make_masks():
        return (rw == 0, rw == W - 1, rh == 0, rh == H - 1)

    slab_vregs = -(-W // 8) * -(-H // 128)
    hoist_masks = slab_vregs <= 16
    hoisted = make_masks() if hoist_masks else None

    def step(_, u):
        m_w0, m_wl, m_h0, m_db = hoisted if hoist_masks else make_masks()
        north = jnp.where(m_w0, zero, pltpu.roll(u, 1, 0))        # u[i-1, j]
        south = jnp.where(m_wl, zero, pltpu.roll(u, W - 1, 0))    # u[i+1, j]
        west = jnp.where(m_h0, zero, pltpu.roll(u, 1, 1))         # u[i, j-1]
        east = jnp.where(m_db, zero, pltpu.roll(u, H - 1, 1))     # u[i, j+1]
        v = quarter * (north + south + west + east) - f_term

        v = jnp.where(m_db, zero, v)                                        # Dirichlet
        v = jnp.where(m_w0, lax.slice_in_dim(v, 1, 2, axis=0), v)           # row 0
        v = jnp.where(m_h0, lax.slice_in_dim(v, 1, 2, axis=1), v)           # col 0
        v = jnp.where(m_wl, lax.slice_in_dim(v, W - 2, W - 1, axis=0), v)   # row W-1
        return v

    u = lax.fori_loop(0, num_iter, step, u,
                      unroll=_pick_unroll(num_iter, slab_vregs))
    o_ref[0] = u.astype(o_ref.dtype)


def _vmem_plan(working_bytes_double_buffered):
    """Return (vmem_limit_bytes or None, use_single_buffering)."""
    try:
        cap = getattr(pltpu.get_tpu_info(), "vmem_capacity_bytes", None)
    except Exception:  # pragma: no cover - defensive, never expected on TPU
        cap = None
    if not cap:
        cap = 64 << 20                      # conservative: v7x per-TC VMEM
    budget = (cap * 3) // 4                 # ~25% headroom for compiler scratch
    if working_bytes_double_buffered <= (12 << 20):
        # Safely under every generation's default scoped-VMEM limit
        # (v5e's default is exactly 16 MiB, hence the conservative threshold).
        return None, False
    if working_bytes_double_buffered <= budget:
        return int(min(working_bytes_double_buffered + (4 << 20), budget)), False
    # Too big double-buffered: single-buffer the HBM<->VMEM pipeline; the DMA
    # latency hides behind num_iter iterations of compute.
    single = working_bytes_double_buffered // 2
    return int(min(single + (4 << 20), budget)), True
    # TODO(synk): if even single-buffered slabs exceed the budget the W axis
    # must be split with a halo exchange, which this kernel does not implement.


def jacobi2d(f, dbc, nbc, num_iter, u0, *, h):
    """f, dbc, nbc, u0: (B, 1, W, H) float32.  Returns (B, 1, W, H).

    dbc / nbc are accepted for interface parity with the PyTorch module but
    are never read (exactly as in the reference code), so they are not DMA'd.
    """
    del dbc, nbc
    B, C, W, H = f.shape
    assert C == 1 and W >= 2 and H >= 2
    num_iter = int(num_iter)

    if H < 128:
        # ---- lane-packed path: blocks of (Bt<=8, W*H) -------------------
        L = W * H
        Bt = B if B <= 8 else 8          # block's 2nd-minor dim must be the
                                         # full extent or a multiple of 8
        grid = pl.cdiv(B, Bt)
        f2 = f.reshape(B, L)             # pure reshapes: no extra HBM passes
        u2 = u0.reshape(B, L)
        vmem_limit, single = _vmem_plan(6 * Bt * L * 4)   # f+u0+out, 2x buffered
        spec_kwargs = {"pipeline_mode": pl.Buffered(1)} if single else {}
        blk = pl.BlockSpec((Bt, L), lambda b: (b, 0), **spec_kwargs)
        kern = functools.partial(_jacobi_kernel_flat, h=float(h),
                                 num_iter=num_iter, W=W, H=H)
        out = pl.pallas_call(
            kern,
            out_shape=jax.ShapeDtypeStruct((B, L), f.dtype),
            grid_spec=pltpu.PrefetchScalarGridSpec(
                num_scalar_prefetch=0, grid=(grid,),
                in_specs=[blk, blk], out_specs=blk),
            compiler_params=pltpu.CompilerParams(
                dimension_semantics=("parallel",),
                vmem_limit_bytes=vmem_limit),
        )(f2, u2)
        return out.reshape(B, 1, W, H)

    # ---- H already lane-dense: one batch per grid step, 2-D slab ---------
    f3 = f.reshape(B, W, H)
    u3 = u0.reshape(B, W, H)
    vmem_limit, single = _vmem_plan(6 * W * H * 4)
    spec_kwargs = {"pipeline_mode": pl.Buffered(1)} if single else {}
    blk = pl.BlockSpec((1, W, H), lambda b: (b, 0, 0), **spec_kwargs)
    kern = functools.partial(_jacobi_kernel_2d, h=float(h), num_iter=num_iter)
    out = pl.pallas_call(
        kern,
        out_shape=jax.ShapeDtypeStruct((B, W, H), f.dtype),
        grid_spec=pltpu.PrefetchScalarGridSpec(
            num_scalar_prefetch=0, grid=(B,),
            in_specs=[blk, blk], out_specs=blk),
        compiler_params=pltpu.CompilerParams(
            dimension_semantics=("parallel",),
            vmem_limit_bytes=vmem_limit),
    )(f3, u3)
    return out.reshape(B, 1, W, H)


def _jacobi2d_ref(f, dbc, nbc, num_iter, u0, *, h):
    """Pure-JAX reference mirroring the PyTorch module."""
    del dbc, nbc
    B, C, W, H = f.shape
    u = u0
    pad = [(0, 0), (0, 0), (1, 1), (1, 1)]
    for _ in range(num_iter):
        up = jnp.pad(u, pad)
        v = 0.25 * (up[:, :, 0:W, 1:H + 1] + up[:, :, 2:W + 2, 1:H + 1]
                    + up[:, :, 1:W + 1, 0:H] + up[:, :, 1:W + 1, 2:H + 2])
        v = v - (h ** 2 / 4.0) * f
        v = v.at[:, :, :, -1].set(0.0)
        v = v.at[:, :, 0, :].set(v[:, :, 1, :])
        v = v.at[:, :, :, 0].set(v[:, :, :, 1])
        v = v.at[:, :, -1, :].set(v[:, :, -2, :])
        u = v
    return u


if __name__ == "__main__":
    key = jax.random.PRNGKey(0)
    k1, k2, k3, k4, k5, k6 = jax.random.split(key, 6)

    # --- case 1: square 16x16 tiles ---
    B, W, H = 2, 16, 16
    h_step = 1.0 / 16.0
    num_iter = 8
    f = jax.random.normal(k1, (B, 1, W, H), dtype=jnp.float32)
    dbc = jax.random.normal(k2, (B, 1, W, H), dtype=jnp.float32)
    nbc = jax.random.normal(k3, (B, 1, W, H), dtype=jnp.float32)
    u0 = jax.random.normal(k4, (B, 1, W, H), dtype=jnp.float32)

    out = jax.block_until_ready(jacobi2d(f, dbc, nbc, num_iter, u0, h=h_step))
    ref = _jacobi2d_ref(f, dbc, nbc, num_iter, u0, h=h_step)
    assert out.shape == (B, 1, W, H)
    assert jnp.allclose(out, ref, atol=1e-5, rtol=1e-5)

    # --- case 2: W > H (previously the transposed path; now the same packed
    #     lane-dense path with no transposes at all) ---
    B2, W2, H2 = 2, 32, 8
    f2 = jax.random.normal(k5, (B2, 1, W2, H2), dtype=jnp.float32)
    u02 = jax.random.normal(k6, (B2, 1, W2, H2), dtype=jnp.float32)
    out2 = jax.block_until_ready(jacobi2d(f2, f2, f2, 5, u02, h=0.25))
    ref2 = _jacobi2d_ref(f2, f2, f2, 5, u02, h=0.25)
    assert out2.shape == (B2, 1, W2, H2)
    assert jnp.allclose(out2, ref2, atol=1e-5, rtol=1e-5)

    print("KERNEL_OK")
</pallas_src>

<mosaic_0001>
module attributes {stable_mosaic.version = 11 : i64} {
  func.func @_jacobi_kernel_flat(%arg0: i32, %arg1: memref<2x256xf32, #tpu.memory_space<vmem>>, %arg2: memref<2x256xf32, #tpu.memory_space<vmem>>, %arg3: memref<2x256xf32, #tpu.memory_space<vmem>>) attributes {dimension_semantics = [#tpu.dimension_semantics<parallel>], iteration_bounds = array<i64: 1>, scalar_prefetch = 0 : i64, scratch_operands = 0 : i64, tpu.core_type = #tpu.core_type<tc>, window_params = [{transform_indices = @transform_0, window_bounds = array<i64: 2, 256>}, {transform_indices = @transform_1, window_bounds = array<i64: 2, 256>}, {transform_indices = @transform_2, window_bounds = array<i64: 2, 256>}]} {
    %c0 = arith.constant 0 : index
    %c0_0 = arith.constant 0 : index
    %0 = vector.load %arg1[%c0, %c0_0] : memref<2x256xf32, #tpu.memory_space<vmem>>, vector<2x256xf32>
    %c0_1 = arith.constant 0 : index
    %c0_2 = arith.constant 0 : index
    %1 = vector.load %arg2[%c0_1, %c0_2] : memref<2x256xf32, #tpu.memory_space<vmem>>, vector<2x256xf32>
    %cst = arith.constant 9.765625E-4 : f32
    %2 = vector.broadcast %cst : f32 to vector<2x256xf32>
    %3 = arith.mulf %2, %0 : vector<2x256xf32>
    %4 = tpu.iota {dimensions = array<i32: 1>} : vector<2x256xi32>
    %c16_i32 = arith.constant 16 : i32
    %c0_i32 = arith.constant 0 : i32
    %5 = arith.cmpi eq, %c16_i32, %c0_i32 : i32
    %c1_i32 = arith.constant 1 : i32
    %6 = arith.select %5, %c1_i32, %c16_i32 : i32
    %7 = vector.broadcast %6 : i32 to vector<2x256xi32>
    %8 = arith.remsi %4, %7 : vector<2x256xi32>
    %c0_i32_3 = arith.constant 0 : i32
    %9 = vector.broadcast %c0_i32_3 : i32 to vector<2x256xi32>
    %10 = arith.cmpi ne, %8, %9 : vector<2x256xi32>
    %c0_i32_4 = arith.constant 0 : i32
    %11 = vector.broadcast %c0_i32_4 : i32 to vector<2x256xi32>
    %12 = arith.cmpi slt, %8, %11 : vector<2x256xi32>
    %c0_i32_5 = arith.constant 0 : i32
    %13 = arith.cmpi slt, %6, %c0_i32_5 : i32
    %14 = vector.broadcast %13 : i1 to vector<2x256xi1>
    %15 = vector.broadcast %14 : vector<2x256xi1> to vector<2x256xi1>
    %16 = arith.xori %12, %15 : vector<2x256xi1>
    %17 = arith.andi %16, %10 : vector<2x256xi1>
    %18 = vector.broadcast %6 : i32 to vector<2x256xi32>
    %19 = arith.addi %8, %18 : vector<2x256xi32>
    %20 = arith.select %17, %19, %8 : vector<2x256xi1>, vector<2x256xi32>
    %c16_i32_6 = arith.constant 16 : i32
    %21 = vector.broadcast %c16_i32_6 : i32 to vector<2x256xi32>
    %22 = arith.cmpi slt, %4, %21 : vector<2x256xi32>
    %c240_i32 = arith.constant 240 : i32
    %23 = vector.broadcast %c240_i32 : i32 to vector<2x256xi32>
    %24 = arith.cmpi sge, %4, %23 : vector<2x256xi32>
    %c0_i32_7 = arith.constant 0 : i32
    %25 = vector.broadcast %c0_i32_7 : i32 to vector<2x256xi32>
    %26 = arith.cmpi eq, %20, %25 : vector<2x256xi32>
    %c15_i32 = arith.constant 15 : i32
    %27 = vector.broadcast %c15_i32 : i32 to vector<2x256xi32>
    %28 = arith.cmpi eq, %20, %27 : vector<2x256xi32>
    %cst_8 = arith.constant 0.000000e+00 : f32
    %cst_9 = arith.constant 2.500000e-01 : f32
    %c0_i32_10 = arith.constant 0 : i32
    %c16_i32_11 = arith.constant 16 : i32
    %29 = tpu.dynamic_rotate %1 by %c16_i32_11 dim 1 : vector<2x256xf32>, i32 -> vector<2x256xf32>
    %30 = vector.broadcast %cst_8 : f32 to vector<2x256xf32>
    %31 = arith.select %22, %30, %29 : vector<2x256xi1>, vector<2x256xf32>
    %c240_i32_12 = arith.constant 240 : i32
    %32 = tpu.dynamic_rotate %1 by %c240_i32_12 dim 1 : vector<2x256xf32>, i32 -> vector<2x256xf32>
    %33 = vector.broadcast %cst_8 : f32 to vector<2x256xf32>
    %34 = arith.select %24, %33, %32 : vector<2x256xi1>, vector<2x256xf32>
    %c1_i32_13 = arith.constant 1 : i32
    %35 = tpu.dynamic_rotate %1 by %c1_i32_13 dim 1 : vector<2x256xf32>, i32 -> vector<2x256xf32>
    %36 = vector.broadcast %cst_8 : f32 to vector<2x256xf32>
    %37 = arith.select %26, %36, %35 : vector<2x256xi1>, vector<2x256xf32>
    %c255_i32 = arith.constant 255 : i32
    %38 = tpu.dynamic_rotate %1 by %c255_i32 dim 1 : vector<2x256xf32>, i32 -> vector<2x256xf32>
    %39 = vector.broadcast %cst_8 : f32 to vector<2x256xf32>
    %40 = arith.select %28, %39, %38 : vector<2x256xi1>, vector<2x256xf32>
    %41 = arith.addf %31, %34 : vector<2x256xf32>
    %42 = arith.addf %41, %37 : vector<2x256xf32>
    %43 = arith.addf %42, %40 : vector<2x256xf32>
    %44 = vector.broadcast %cst_9 : f32 to vector<2x256xf32>
    %45 = arith.mulf %44, %43 : vector<2x256xf32>
    %46 = arith.subf %45, %3 : vector<2x256xf32>
    %47 = vector.broadcast %cst_8 : f32 to vector<2x256xf32>
    %48 = arith.select %28, %47, %46 : vector<2x256xi1>, vector<2x256xf32>
    %c240_i32_14 = arith.constant 240 : i32
    %49 = tpu.dynamic_rotate %48 by %c240_i32_14 dim 1 : vector<2x256xf32>, i32 -> vector<2x256xf32>
    %50 = arith.select %22, %49, %48 : vector<2x256xi1>, vector<2x256xf32>
    %c255_i32_15 = arith.constant 255 : i32
    %51 = tpu.dynamic_rotate %50 by %c255_i32_15 dim 1 : vector<2x256xf32>, i32 -> vector<2x256xf32>
    %52 = arith.select %26, %51, %50 : vector<2x256xi1>, vector<2x256xf32>
    %c16_i32_16 = arith.constant 16 : i32
    %53 = tpu.dynamic_rotate %52 by %c16_i32_16 dim 1 : vector<2x256xf32>, i32 -> vector<2x256xf32>
    %54 = arith.select %24, %53, %52 : vector<2x256xi1>, vector<2x256xf32>
    %c1_i32_17 = arith.constant 1 : i32
    %c16_i32_18 = arith.constant 16 : i32
    %55 = tpu.dynamic_rotate %54 by %c16_i32_18 dim 1 : vector<2x256xf32>, i32 -> vector<2x256xf32>
    %56 = vector.broadcast %cst_8 : f32 to vector<2x256xf32>
    %57 = arith.select %22, %56, %55 : vector<2x256xi1>, vector<2x256xf32>
    %c240_i32_19 = arith.constant 240 : i32
    %58 = tpu.dynamic_rotate %54 by %c240_i32_19 dim 1 : vector<2x256xf32>, i32 -> vector<2x256xf32>
    %59 = vector.broadcast %cst_8 : f32 to vector<2x256xf32>
    %60 = arith.select %24, %59, %58 : vector<2x256xi1>, vector<2x256xf32>
    %c1_i32_20 = arith.constant 1 : i32
    %61 = tpu.dynamic_rotate %54 by %c1_i32_20 dim 1 : vector<2x256xf32>, i32 -> vector<2x256xf32>
    %62 = vector.broadcast %cst_8 : f32 to vector<2x256xf32>
    %63 = arith.select %26, %62, %61 : vector<2x256xi1>, vector<2x256xf32>
    %c255_i32_21 = arith.constant 255 : i32
    %64 = tpu.dynamic_rotate %54 by %c255_i32_21 dim 1 : vector<2x256xf32>, i32 -> vector<2x256xf32>
    %65 = vector.broadcast %cst_8 : f32 to vector<2x256xf32>
    %66 = arith.select %28, %65, %64 : vector<2x256xi1>, vector<2x256xf32>
    %67 = arith.addf %57, %60 : vector<2x256xf32>
    %68 = arith.addf %67, %63 : vector<2x256xf32>
    %69 = arith.addf %68, %66 : vector<2x256xf32>
    %70 = vector.broadcast %cst_9 : f32 to vector<2x256xf32>
    %71 = arith.mulf %70, %69 : vector<2x256xf32>
    %72 = arith.subf %71, %3 : vector<2x256xf32>
    %73 = vector.broadcast %cst_8 : f32 to vector<2x256xf32>
    %74 = arith.select %28, %73, %72 : vector<2x256xi1>, vector<2x256xf32>
    %c240_i32_22 = arith.constant 240 : i32
    %75 = tpu.dynamic_rotate %74 by %c240_i32_22 dim 1 : vector<2x256xf32>, i32 -> vector<2x256xf32>
    %76 = arith.select %22, %75, %74 : vector<2x256xi1>, vector<2x256xf32>
    %c255_i32_23 = arith.constant 255 : i32
    %77 = tpu.dynamic_rotate %76 by %c255_i32_23 dim 1 : vector<2x256xf32>, i32 -> vector<2x256xf32>
    %78 = arith.select %26, %77, %76 : vector<2x256xi1>, vector<2x256xf32>
    %c16_i32_24 = arith.constant 16 : i32
    %79 = tpu.dynamic_rotate %78 by %c16_i32_24 dim 1 : vector<2x256xf32>, i32 -> vector<2x256xf32>
    %80 = arith.select %24, %79, %78 : vector<2x256xi1>, vector<2x256xf32>
    %c2_i32 = arith.constant 2 : i32
    %c16_i32_25 = arith.constant 16 : i32
    %81 = tpu.dynamic_rotate %80 by %c16_i32_25 dim 1 : vector<2x256xf32>, i32 -> vector<2x256xf32>
    %82 = vector.broadcast %cst_8 : f32 to vector<2x256xf32>
    %83 = arith.select %22, %82, %81 : vector<2x256xi1>, vector<2x256xf32>
    %c240_i32_26 = arith.constant 240 : i32
    %84 = tpu.dynamic_rotate %80 by %c240_i32_26 dim 1 : vector<2x256xf32>, i32 -> vector<2x256xf32>
    %85 = vector.broadcast %cst_8 : f32 to vector<2x256xf32>
    %86 = arith.select %24, %85, %84 : vector<2x256xi1>, vector<2x256xf32>
    %c1_i32_27 = arith.constant 1 : i32
    %87 = tpu.dynamic_rotate %80 by %c1_i32_27 dim 1 : vector<2x256xf32>, i32 -> vector<2x256xf32>
    %88 = vector.broadcast %cst_8 : f32 to vector<2x256xf32>
    %89 = arith.select %26, %88, %87 : vector<2x256xi1>, vector<2x256xf32>
    %c255_i32_28 = arith.constant 255 : i32
    %90 = tpu.dynamic_rotate %80 by %c255_i32_28 dim 1 : vector<2x256xf32>, i32 -> vector<2x256xf32>
    %91 = vector.broadcast %cst_8 : f32 to vector<2x256xf32>
    %92 = arith.select %28, %91, %90 : vector<2x256xi1>, vector<2x256xf32>
    %93 = arith.addf %83, %86 : vector<2x256xf32>
    %94 = arith.addf %93, %89 : vector<2x256xf32>
    %95 = arith.addf %94, %92 : vector<2x256xf32>
    %96 = vector.broadcast %cst_9 : f32 to vector<2x256xf32>
    %97 = arith.mulf %96, %95 : vector<2x256xf32>
    %98 = arith.subf %97, %3 : vector<2x256xf32>
    %99 = vector.broadcast %cst_8 : f32 to vector<2x256xf32>
    %100 = arith.select %28, %99, %98 : vector<2x256xi1>, vector<2x256xf32>
    %c240_i32_29 = arith.constant 240 : i32
    %101 = tpu.dynamic_rotate %100 by %c240_i32_29 dim 1 : vector<2x256xf32>, i32 -> vector<2x256xf32>
    %102 = arith.select %22, %101, %100 : vector<2x256xi1>, vector<2x256xf32>
    %c255_i32_30 = arith.constant 255 : i32
    %103 = tpu.dynamic_rotate %102 by %c255_i32_30 dim 1 : vector<2x256xf32>, i32 -> vector<2x256xf32>
    %104 = arith.select %26, %103, %102 : vector<2x256xi1>, vector<2x256xf32>
    %c16_i32_31 = arith.constant 16 : i32
    %105 = tpu.dynamic_rotate %104 by %c16_i32_31 dim 1 : vector<2x256xf32>, i32 -> vector<2x256xf32>
    %106 = arith.select %24, %105, %104 : vector<2x256xi1>, vector<2x256xf32>
    %c3_i32 = arith.constant 3 : i32
    %c16_i32_32 = arith.constant 16 : i32
    %107 = tpu.dynamic_rotate %106 by %c16_i32_32 dim 1 : vector<2x256xf32>, i32 -> vector<2x256xf32>
    %108 = vector.broadcast %cst_8 : f32 to vector<2x256xf32>
    %109 = arith.select %22, %108, %107 : vector<2x256xi1>, vector<2x256xf32>
    %c240_i32_33 = arith.constant 240 : i32
    %110 = tpu.dynamic_rotate %106 by %c240_i32_33 dim 1 : vector<2x256xf32>, i32 -> vector<2x256xf32>
    %111 = vector.broadcast %cst_8 : f32 to vector<2x256xf32>
    %112 = arith.select %24, %111, %110 : vector<2x256xi1>, vector<2x256xf32>
    %c1_i32_34 = arith.constant 1 : i32
    %113 = tpu.dynamic_rotate %106 by %c1_i32_34 dim 1 : vector<2x256xf32>, i32 -> vector<2x256xf32>
    %114 = vector.broadcast %cst_8 : f32 to vector<2x256xf32>
    %115 = arith.select %26, %114, %113 : vector<2x256xi1>, vector<2x256xf32>
    %c255_i32_35 = arith.constant 255 : i32
    %116 = tpu.dynamic_rotate %106 by %c255_i32_35 dim 1 : vector<2x256xf32>, i32 -> vector<2x256xf32>
    %117 = vector.broadcast %cst_8 : f32 to vector<2x256xf32>
    %118 = arith.select %28, %117, %116 : vector<2x256xi1>, vector<2x256xf32>
    %119 = arith.addf %109, %112 : vector<2x256xf32>
    %120 = arith.addf %119, %115 : vector<2x256xf32>
    %121 = arith.addf %120, %118 : vector<2x256xf32>
    %122 = vector.broadcast %cst_9 : f32 to vector<2x256xf32>
    %123 = arith.mulf %122, %121 : vector<2x256xf32>
    %124 = arith.subf %123, %3 : vector<2x256xf32>
    %125 = vector.broadcast %cst_8 : f32 to vector<2x256xf32>
    %126 = arith.select %28, %125, %124 : vector<2x256xi1>, vector<2x256xf32>
    %c240_i32_36 = arith.constant 240 : i32
    %127 = tpu.dynamic_rotate %126 by %c240_i32_36 dim 1 : vector<2x256xf32>, i32 -> vector<2x256xf32>
    %128 = arith.select %22, %127, %126 : vector<2x256xi1>, vector<2x256xf32>
    %c255_i32_37 = arith.constant 255 : i32
    %129 = tpu.dynamic_rotate %128 by %c255_i32_37 dim 1 : vector<2x256xf32>, i32 -> vector<2x256xf32>
    %130 = arith.select %26, %129, %128 : vector<2x256xi1>, vector<2x256xf32>
    %c16_i32_38 = arith.constant 16 : i32
    %131 = tpu.dynamic_rotate %130 by %c16_i32_38 dim 1 : vector<2x256xf32>, i32 -> vector<2x256xf32>
    %132 = arith.select %24, %131, %130 : vector<2x256xi1>, vector<2x256xf32>
    %c4_i32 = arith.constant 4 : i32
    %c16_i32_39 = arith.constant 16 : i32
    %133 = tpu.dynamic_rotate %132 by %c16_i32_39 dim 1 : vector<2x256xf32>, i32 -> vector<2x256xf32>
    %134 = vector.broadcast %cst_8 : f32 to vector<2x256xf32>
    %135 = arith.select %22, %134, %133 : vector<2x256xi1>, vector<2x256xf32>
    %c240_i32_40 = arith.constant 240 : i32
    %136 = tpu.dynamic_rotate %132 by %c240_i32_40 dim 1 : vector<2x256xf32>, i32 -> vector<2x256xf32>
    %137 = vector.broadcast %cst_8 : f32 to vector<2x256xf32>
    %138 = arith.select %24, %137, %136 : vector<2x256xi1>, vector<2x256xf32>
    %c1_i32_41 = arith.constant 1 : i32
    %139 = tpu.dynamic_rotate %132 by %c1_i32_41 dim 1 : vector<2x256xf32>, i32 -> vector<2x256xf32>
    %140 = vector.broadcast %cst_8 : f32 to vector<2x256xf32>
    %141 = arith.select %26, %140, %139 : vector<2x256xi1>, vector<2x256xf32>
    %c255_i32_42 = arith.constant 255 : i32
    %142 = tpu.dynamic_rotate %132 by %c255_i32_42 dim 1 : vector<2x256xf32>, i32 -> vector<2x256xf32>
    %143 = vector.broadcast %cst_8 : f32 to vector<2x256xf32>
    %144 = arith.select %28, %143, %142 : vector<2x256xi1>, vector<2x256xf32>
    %145 = arith.addf %135, %138 : vector<2x256xf32>
    %146 = arith.addf %145, %141 : vector<2x256xf32>
    %147 = arith.addf %146, %144 : vector<2x256xf32>
    %148 = vector.broadcast %cst_9 : f32 to vector<2x256xf32>
    %149 = arith.mulf %148, %147 : vector<2x256xf32>
    %150 = arith.subf %149, %3 : vector<2x256xf32>
    %151 = vector.broadcast %cst_8 : f32 to vector<2x256xf32>
    %152 = arith.select %28, %151, %150 : vector<2x256xi1>, vector<2x256xf32>
    %c240_i32_43 = arith.constant 240 : i32
    %153 = tpu.dynamic_rotate %152 by %c240_i32_43 dim 1 : vector<2x256xf32>, i32 -> vector<2x256xf32>
    %154 = arith.select %22, %153, %152 : vector<2x256xi1>, vector<2x256xf32>
    %c255_i32_44 = arith.constant 255 : i32
    %155 = tpu.dynamic_rotate %154 by %c255_i32_44 dim 1 : vector<2x256xf32>, i32 -> vector<2x256xf32>
    %156 = arith.select %26, %155, %154 : vector<2x256xi1>, vector<2x256xf32>
    %c16_i32_45 = arith.constant 16 : i32
    %157 = tpu.dynamic_rotate %156 by %c16_i32_45 dim 1 : vector<2x256xf32>, i32 -> vector<2x256xf32>
    %158 = arith.select %24, %157, %156 : vector<2x256xi1>, vector<2x256xf32>
    %c5_i32 = arith.constant 5 : i32
    %c16_i32_46 = arith.constant 16 : i32
    %159 = tpu.dynamic_rotate %158 by %c16_i32_46 dim 1 : vector<2x256xf32>, i32 -> vector<2x256xf32>
    %160 = vector.broadcast %cst_8 : f32 to vector<2x256xf32>
    %161 = arith.select %22, %160, %159 : vector<2x256xi1>, vector<2x256xf32>
    %c240_i32_47 = arith.constant 240 : i32
    %162 = tpu.dynamic_rotate %158 by %c240_i32_47 dim 1 : vector<2x256xf32>, i32 -> vector<2x256xf32>
    %163 = vector.broadcast %cst_8 : f32 to vector<2x256xf32>
    %164 = arith.select %24, %163, %162 : vector<2x256xi1>, vector<2x256xf32>
    %c1_i32_48 = arith.constant 1 : i32
    %165 = tpu.dynamic_rotate %158 by %c1_i32_48 dim 1 : vector<2x256xf32>, i32 -> vector<2x256xf32>
    %166 = vector.broadcast %cst_8 : f32 to vector<2x256xf32>
    %167 = arith.select %26, %166, %165 : vector<2x256xi1>, vector<2x256xf32>
    %c255_i32_49 = arith.constant 255 : i32
    %168 = tpu.dynamic_rotate %158 by %c255_i32_49 dim 1 : vector<2x256xf32>, i32 -> vector<2x256xf32>
    %169 = vector.broadcast %cst_8 : f32 to vector<2x256xf32>
    %170 = arith.select %28, %169, %168 : vector<2x256xi1>, vector<2x256xf32>
    %171 = arith.addf %161, %164 : vector<2x256xf32>
    %172 = arith.addf %171, %167 : vector<2x256xf32>
    %173 = arith.addf %172, %170 : vector<2x256xf32>
    %174 = vector.broadcast %cst_9 : f32 to vector<2x256xf32>
    %175 = arith.mulf %174, %173 : vector<2x256xf32>
    %176 = arith.subf %175, %3 : vector<2x256xf32>
    %177 = vector.broadcast %cst_8 : f32 to vector<2x256xf32>
    %178 = arith.select %28, %177, %176 : vector<2x256xi1>, vector<2x256xf32>
    %c240_i32_50 = arith.constant 240 : i32
    %179 = tpu.dynamic_rotate %178 by %c240_i32_50 dim 1 : vector<2x256xf32>, i32 -> vector<2x256xf32>
    %180 = arith.select %22, %179, %178 : vector<2x256xi1>, vector<2x256xf32>
    %c255_i32_51 = arith.constant 255 : i32
    %181 = tpu.dynamic_rotate %180 by %c255_i32_51 dim 1 : vector<2x256xf32>, i32 -> vector<2x256xf32>
    %182 = arith.select %26, %181, %180 : vector<2x256xi1>, vector<2x256xf32>
    %c16_i32_52 = arith.constant 16 : i32
    %183 = tpu.dynamic_rotate %182 by %c16_i32_52 dim 1 : vector<2x256xf32>, i32 -> vector<2x256xf32>
    %184 = arith.select %24, %183, %182 : vector<2x256xi1>, vector<2x256xf32>
    %c6_i32 = arith.constant 6 : i32
    %c16_i32_53 = arith.constant 16 : i32
    %185 = tpu.dynamic_rotate %184 by %c16_i32_53 dim 1 : vector<2x256xf32>, i32 -> vector<2x256xf32>
    %186 = vector.broadcast %cst_8 : f32 to vector<2x256xf32>
    %187 = arith.select %22, %186, %185 : vector<2x256xi1>, vector<2x256xf32>
    %c240_i32_54 = arith.constant 240 : i32
    %188 = tpu.dynamic_rotate %184 by %c240_i32_54 dim 1 : vector<2x256xf32>, i32 -> vector<2x256xf32>
    %189 = vector.broadcast %cst_8 : f32 to vector<2x256xf32>
    %190 = arith.select %24, %189, %188 : vector<2x256xi1>, vector<2x256xf32>
    %c1_i32_55 = arith.constant 1 : i32
    %191 = tpu.dynamic_rotate %184 by %c1_i32_55 dim 1 : vector<2x256xf32>, i32 -> vector<2x256xf32>
    %192 = vector.broadcast %cst_8 : f32 to vector<2x256xf32>
    %193 = arith.select %26, %192, %191 : vector<2x256xi1>, vector<2x256xf32>
    %c255_i32_56 = arith.constant 255 : i32
    %194 = tpu.dynamic_rotate %184 by %c255_i32_56 dim 1 : vector<2x256xf32>, i32 -> vector<2x256xf32>
    %195 = vector.broadcast %cst_8 : f32 to vector<2x256xf32>
    %196 = arith.select %28, %195, %194 : vector<2x256xi1>, vector<2x256xf32>
    %197 = arith.addf %187, %190 : vector<2x256xf32>
    %198 = arith.addf %197, %193 : vector<2x256xf32>
    %199 = arith.addf %198, %196 : vector<2x256xf32>
    %200 = vector.broadcast %cst_9 : f32 to vector<2x256xf32>
    %201 = arith.mulf %200, %199 : vector<2x256xf32>
    %202 = arith.subf %201, %3 : vector<2x256xf32>
    %203 = vector.broadcast %cst_8 : f32 to vector<2x256xf32>
    %204 = arith.select %28, %203, %202 : vector<2x256xi1>, vector<2x256xf32>
    %c240_i32_57 = arith.constant 240 : i32
    %205 = tpu.dynamic_rotate %204 by %c240_i32_57 dim 1 : vector<2x256xf32>, i32 -> vector<2x256xf32>
    %206 = arith.select %22, %205, %204 : vector<2x256xi1>, vector<2x256xf32>
    %c255_i32_58 = arith.constant 255 : i32
    %207 = tpu.dynamic_rotate %206 by %c255_i32_58 dim 1 : vector<2x256xf32>, i32 -> vector<2x256xf32>
    %208 = arith.select %26, %207, %206 : vector<2x256xi1>, vector<2x256xf32>
    %c16_i32_59 = arith.constant 16 : i32
    %209 = tpu.dynamic_rotate %208 by %c16_i32_59 dim 1 : vector<2x256xf32>, i32 -> vector<2x256xf32>
    %210 = arith.select %24, %209, %208 : vector<2x256xi1>, vector<2x256xf32>
    %c7_i32 = arith.constant 7 : i32
    %c16_i32_60 = arith.constant 16 : i32
    %211 = tpu.dynamic_rotate %210 by %c16_i32_60 dim 1 : vector<2x256xf32>, i32 -> vector<2x256xf32>
    %212 = vector.broadcast %cst_8 : f32 to vector<2x256xf32>
    %213 = arith.select %22, %212, %211 : vector<2x256xi1>, vector<2x256xf32>
    %c240_i32_61 = arith.constant 240 : i32
    %214 = tpu.dynamic_rotate %210 by %c240_i32_61 dim 1 : vector<2x256xf32>, i32 -> vector<2x256xf32>
    %215 = vector.broadcast %cst_8 : f32 to vector<2x256xf32>
    %216 = arith.select %24, %215, %214 : vector<2x256xi1>, vector<2x256xf32>
    %c1_i32_62 = arith.constant 1 : i32
    %217 = tpu.dynamic_rotate %210 by %c1_i32_62 dim 1 : vector<2x256xf32>, i32 -> vector<2x256xf32>
    %218 = vector.broadcast %cst_8 : f32 to vector<2x256xf32>
    %219 = arith.select %26, %218, %217 : vector<2x256xi1>, vector<2x256xf32>
    %c255_i32_63 = arith.constant 255 : i32
    %220 = tpu.dynamic_rotate %210 by %c255_i32_63 dim 1 : vector<2x256xf32>, i32 -> vector<2x256xf32>
    %221 = vector.broadcast %cst_8 : f32 to vector<2x256xf32>
    %222 = arith.select %28, %221, %220 : vector<2x256xi1>, vector<2x256xf32>
    %223 = arith.addf %213, %216 : vector<2x256xf32>
    %224 = arith.addf %223, %219 : vector<2x256xf32>
    %225 = arith.addf %224, %222 : vector<2x256xf32>
    %226 = vector.broadcast %cst_9 : f32 to vector<2x256xf32>
    %227 = arith.mulf %226, %225 : vector<2x256xf32>
    %228 = arith.subf %227, %3 : vector<2x256xf32>
    %229 = vector.broadcast %cst_8 : f32 to vector<2x256xf32>
    %230 = arith.select %28, %229, %228 : vector<2x256xi1>, vector<2x256xf32>
    %c240_i32_64 = arith.constant 240 : i32
    %231 = tpu.dynamic_rotate %230 by %c240_i32_64 dim 1 : vector<2x256xf32>, i32 -> vector<2x256xf32>
    %232 = arith.select %22, %231, %230 : vector<2x256xi1>, vector<2x256xf32>
    %c255_i32_65 = arith.constant 255 : i32
    %233 = tpu.dynamic_rotate %232 by %c255_i32_65 dim 1 : vector<2x256xf32>, i32 -> vector<2x256xf32>
    %234 = arith.select %26, %233, %232 : vector<2x256xi1>, vector<2x256xf32>
    %c16_i32_66 = arith.constant 16 : i32
    %235 = tpu.dynamic_rotate %234 by %c16_i32_66 dim 1 : vector<2x256xf32>, i32 -> vector<2x256xf32>
    %236 = arith.select %24, %235, %234 : vector<2x256xi1>, vector<2x256xf32>
    %c0_67 = arith.constant 0 : index
    %c0_68 = arith.constant 0 : index
    %237 = vector.load %arg3[%c0_67, %c0_68] : memref<2x256xf32, #tpu.memory_space<vmem>>, vector<2x256xf32>
    tpu.vector_store %arg3[%c0_67, %c0_68], %236 {strides = array<i32>} : memref<2x256xf32, #tpu.memory_space<vmem>>, vector<2x256xf32>,
    return
  }
  func.func @transform_0(%arg0: i32) -> (i32, i32) {
    %c0_i32 = arith.constant 0 : i32
    %c0_i32_0 = arith.constant 0 : i32
    return %arg0, %c0_i32 : i32, i32
  }
  func.func @transform_1(%arg0: i32) -> (i32, i32) {
    %c0_i32 = arith.constant 0 : i32
    %c0_i32_0 = arith.constant 0 : i32
    return %arg0, %c0_i32 : i32, i32
  }
  func.func @transform_2(%arg0: i32) -> (i32, i32) {
    %c0_i32 = arith.constant 0 : i32
    %c0_i32_0 = arith.constant 0 : i32
    return %arg0, %c0_i32 : i32, i32
  }
}

</mosaic_0001>

<bundles_post_ra>
// kernel: tpu_custom_call.1
= control target key start
LH: loop header
LB: loop body
LE: loop exit
PB: predicated region body
PF: predicated region fallthrough
CT: control target
= control target key end

     0   :  { %7 = vsyncpa [#allocation3], 0  ;;  %s1362_s0 = inlined_call_operand.hbm [shape: f32[2,256], index: 0, kind: input, shape index: {}]   ;;  %s1363_s1 = inlined_call_operand.hbm [shape: f32[2,256], index: 1, kind: input, shape index: {}]   ;;  %s1364_s2 = inlined_call_operand.hbm [shape: f32[2,256], index: 2, kind: output, shape index: {}]  }
   0x1   :  { %8 = vsyncpa [#allocation6], 0 }
   0x2   :  { %9 = vsyncpa [#allocation4], 0  ;;  %s15_s11 = sshll.u32 %s1362_s0, 4  ;;  %s797_s12 = smov [#allocation2]   ;;  %s16_s11 = int_to_ptr.hbm [resolvable:$true] %s15_s11 }
   0x3   :  { %s17_s13 = sshll.u32 %s797_s12, 4  ;;  %s26_s16 = sshll.u32 %s1363_s1, 4  ;;  %s18_s13 = int_to_ptr.vmem [resolvable:$true] %s17_s13  ;;  %s27_s16 = int_to_ptr.hbm [resolvable:$true] %s26_s16 }
   0x4   :  { %20 = dma.hbm_to_vmem [thread:$0]  %s16_s11, 64, %s18_s13, [#allocation3]  }
   0x5   :  { %s798_s17 = smov [#allocation5]  }
   0x6   :  { %s28_s18 = sshll.u32 %s798_s17, 4  ;;  %s29_s18 = int_to_ptr.vmem [resolvable:$true] %s28_s18 }
   0x7   :  { %31 = dma.hbm_to_vmem [thread:$0]  %s27_s16, 64, %s29_s18, [#allocation6]  }
   0x8   :  { %791 = dma.done.wait [#allocation3], 64  }
   0x9   :  { %792 = vsyncadd [#allocation3], 4294967232 }
   0xa   :  { %793 = dma.done.wait [#allocation6], 64  }
   0xb   :  { %794 = vsyncadd [#allocation6], 4294967232  ;;  %v41_v0 = vld [vmem:[#allocation5] sm:$0xf]  ;;  %s799_s0 = smov 16   ;;  %s800_s1 = smov 112   ;;  %v43_v14 = vlaneseq }
   0xc   :  { %79 = vst [vmem:[#allocation1] ss:$4 sm:$0xff] %v41_v0  ;;  %s801_s19 = smov 1   ;;  %v40_v7 = vld [vmem:[#allocation2] sm:$0xf]  ;;  %s802_s20 = smov 127  }
   0xd   :  { %v830_v8 = vmul.f32 0.0009765625, %v40_v7  ;;  %v837_v17 = vand.u32 127, %v43_v14  ;;  %s803_s21 = smov [#allocation7]   ;;  %s701_s25 = sshll.u32 %s1364_s2, 4  ;;  %vm690_vm9 = vcmask 1041408   ;;  %s702_s25 = int_to_ptr.hbm [resolvable:$true] %s701_s25 }
   0xe   :  { %s699_s22 = sshll.u32 %s803_s21, 4  ;;  %s700_s22 = int_to_ptr.vmem [resolvable:$true] %s699_s22 }
   0xf   :  { %v840_v18 = vadd.s32 128, %v837_v17  ;;  %vm70_vm0 = vcmp.lt.s32.totalorder %v837_v17, 16  ;;  %vm101_vm1 = vcmp.lt.s32.totalorder %v837_v17, 112  ;;  %v50_v20 = vand.u32 15, %v837_v17 }
  0x10   :  { %vm115_vm3 = vcmp.lt.s32.totalorder %v837_v17, 1  ;;  %vm129_vm6 = vcmp.lt.s32.totalorder %v837_v17, 127 }
  0x11   :  { %vm73_vm2 = vcmp.ge.s32.totalorder %v840_v18, 240  ;;  %v57_v21 = vand.u32 15, %v840_v18  ;;  %vm860_vm4 = vcmp.eq.s32.totalorder %v50_v20, 0  ;;  %vm873_vm7 = vcmp.eq.s32.totalorder %v50_v20, 15 }
  0x13   :  { %v80_v1 = vld.sshfl [vmem:[#allocation1] sm:$0xff pattern:$0x73625140]  ;;  %v81_v2 = vld.sshfl [vmem:[#allocation1 + $0x8] sm:$0xff pattern:$0x73625140] }
  0x14   :  { %84 = vrot.lane.b32.xlu0 %v80_v1, %s799_s0  ;;  %92 = vst [vmem:[#allocation1] ss:$4 sm:$0xff] %v41_v0  ;;  %vm864_vm5 = vcmp.eq.s32.totalorder %v57_v21, 0  ;;  %vm877_vm8 = vcmp.eq.s32.totalorder %v57_v21, 15 }
  0x1b   :  { %v93_v3 = vld.sshfl [vmem:[#allocation1] sm:$0xff pattern:$0x73625140]  ;;  %v94_v4 = vld.sshfl [vmem:[#allocation1 + $0x8] sm:$0xff pattern:$0x73625140] }
  0x1c   :  { %86 = vrot.lane.b32.xlu0 %v81_v2, %s799_s0  ;;  %97 = vrot.lane.b32.xlu1 %v93_v3, %s800_s1  ;;  %106 = vst [vmem:[#allocation1] ss:$4 sm:$0xff] %v41_v0 }
  0x23   :  { %v107_v5 = vld.sshfl [vmem:[#allocation1] sm:$0xff pattern:$0x73625140]  ;;  %v108_v6 = vld.sshfl [vmem:[#allocation1 + $0x8] sm:$0xff pattern:$0x73625140] }
  0x24   :  { %99 = vrot.lane.b32.xlu1 %v94_v4, %s800_s1  ;;  %120 = vst [vmem:[#allocation1] ss:$4 sm:$0xff] %v41_v0  ;;  %111 = vrot.lane.b32.xlu2 %v107_v5, %s801_s19 }
  0x2b   :  { %v122_v9 = vld.sshfl [vmem:[#allocation1 + $0x8] sm:$0xff pattern:$0x73625140]  ;;  %v121_v10 = vld.sshfl [vmem:[#allocation1] sm:$0xff pattern:$0x73625140] }
  0x2c   :  { %127 = vrot.lane.b32.xlu1 %v122_v9, %s802_s20  ;;  %125 = vrot.lane.b32.xlu0 %v121_v10, %s802_s20  ;;  %143 = vst [vmem:[#allocation1] ss:$4 sm:$0xff] %v830_v8 }
  0x2d   :  { %113 = vrot.lane.b32.xlu2 %v108_v6, %s801_s19 }
  0x33   :  { %v145_v11 = vld.sshfl [vmem:[#allocation1 + $0x8] sm:$0xff pattern:$0x73625140]  ;;  %v144_v12 = vld.sshfl [vmem:[#allocation1] sm:$0xff pattern:$0x73625140] }
  0x34   :  { %216 = vst [vmem:[#allocation1] ss:$4 sm:$0xff] %v830_v8 }
  0x3b   :  { %v218_v6 = vld.sshfl [vmem:[#allocation1 + $0x8] sm:$0xff pattern:$0x73625140]  ;;  %v217_v7 = vld.sshfl [vmem:[#allocation1] sm:$0xff pattern:$0x73625140] }
  0x3c   :  { %289 = vst [vmem:[#allocation1] ss:$4 sm:$0xff] %v830_v8 }
  0x7e   :  { %v112_v15 = vpop.permute.xlu2 %111 }
  0x86   :  { %v85_v13 = vpop.permute.xlu0 %84 }
  0x87   :  { %v114_v25 = vpop.permute.xlu2 %113 }
  0x88   :  { %v116_v32 = vsel %vm115_vm3, %v112_v15, %v114_v25  ;;  %v117_v33 = vsel %vm115_vm3, %v114_v25, %v112_v15 }
  0x89   :  { %v118_v38 = vsel %vm860_vm4, 0.0, %v117_v33  ;;  %v119_v39 = vsel %vm864_vm5, 0.0, %v116_v32 }
  0x8e   :  { %v98_v16 = vpop.permute.xlu1 %97  ;;  %v87_v19 = vpop.permute.xlu0 %86 }
  0x8f   :  { %v89_v23 = vsel %vm70_vm0, %v87_v19, %v85_v13  ;;  %v88_v28 = vsel %vm70_vm0, %v85_v13, %v87_v19 }
  0x90   :  { %v90_v29 = vsel %vm70_vm0, 0.0, %v89_v23 }
  0x96   :  { %v100_v22 = vpop.permute.xlu1 %99 }
  0x97   :  { %v103_v24 = vsel %vm101_vm1, %v100_v22, %v98_v16  ;;  %v102_v26 = vsel %vm101_vm1, %v98_v16, %v100_v22 }
  0x98   :  { %v105_v27 = vsel %vm73_vm2, 0.0, %v103_v24  ;;  %v134_v34 = vadd.f32 %v102_v26, %v90_v29 }
  0x99   :  { %v135_v35 = vadd.f32 %v105_v27, %v88_v28 }
  0x9a   :  { %v136_v42 = vadd.f32 %v134_v34, %v118_v38 }
  0x9b   :  { %v137_v43 = vadd.f32 %v135_v35, %v119_v39 }
  0x9e   :  { %v128_v40 = vpop.permute.xlu1 %127  ;;  %v126_v41 = vpop.permute.xlu0 %125 }
  0x9f   :  { %v130_v44 = vsel %vm129_vm6, %v126_v41, %v128_v40  ;;  %v131_v45 = vsel %vm129_vm6, %v128_v40, %v126_v41 }
  0xa0   :  { %v132_v46 = vsel %vm873_vm7, 0.0, %v130_v44  ;;  %v133_v47 = vsel %vm877_vm8, 0.0, %v131_v45 }
  0xa1   :  { %v138_v48 = vadd.f32 %v136_v42, %v132_v46  ;;  %v139_v49 = vadd.f32 %v137_v43, %v133_v47 }
  0xa3   :  { %v140_v50 = vmul.f32 0.25, %v138_v48  ;;  %v141_v51 = vmul.f32 0.25, %v139_v49 }
  0xa5   :  { %v149_v52 = vsub.f32 %v141_v51, %v145_v11  ;;  %v148_v53 = vsub.f32 %v140_v50, %v144_v12 }
  0xa7   :  { %v151_v54 = vsel %vm877_vm8, 0.0, %v149_v52  ;;  %v150_v55 = vsel %vm873_vm7, 0.0, %v148_v53 }
  0xa8   :  { %154 = vrot.lane.b32.xlu0 %v151_v54, %s800_s1  ;;  %152 = vrot.lane.b32.xlu2 %v150_v55, %s800_s1 }
  0xb0   :  { %162 = vrot.lane.b32.xlu2 %v151_v54, %s802_s20 }
 0x102   :  { %v153_v56 = vpop.permute.xlu2 %152 }
 0x10a   :  { %v163_v60 = vpop.permute.xlu2 %162 }
 0x11a   :  { %v155_v57 = vpop.permute.xlu0 %154 }
 0x11b   :  { %v156_v58 = vsel %vm101_vm1, %v153_v56, %v155_v57 }
 0x11c   :  { %v158_v59 = vsel %vm70_vm0, %v156_v58, %v150_v55 }
 0x11d   :  { %160 = vrot.lane.b32.xlu1 %v158_v59, %s802_s20 }
 0x18f   :  { %v161_v61 = vpop.permute.xlu1 %160 }
 0x190   :  { %v164_v62 = vsel %vm129_vm6, %v161_v61, %v163_v60  ;;  %v165_v63 = vsel %vm129_vm6, %v163_v60, %v161_v61 }
 0x191   :  { %v166_v0 = vsel %vm860_vm4, %v164_v62, %v158_v59  ;;  %v167_v1 = vsel %vm864_vm5, %v165_v63, %v151_v54  ;;  %v291_v63 = vld.sshfl [vmem:[#allocation1 + $0x8] sm:$0xff pattern:$0x73625140] }
 0x192   :  { %170 = vrot.lane.b32.xlu1 %v167_v1, %s799_s0  ;;  %176 = vrot.lane.b32.xlu2 %v166_v0, %s799_s0 }
 0x193   :  { %168 = vrot.lane.b32.xlu0 %v166_v0, %s799_s0 }
 0x19a   :  { %184 = vrot.lane.b32.xlu1 %v166_v0, %s800_s1 }
 0x19b   :  { %192 = vrot.lane.b32.xlu0 %v166_v0, %s801_s19 }
 0x1ec   :  { %v177_v9 = vpop.permute.xlu2 %176 }
 0x204   :  { %v171_v2 = vpop.permute.xlu1 %170 }
 0x205   :  { %v169_v3 = vpop.permute.xlu0 %168 }
 0x206   :  { %v172_v4 = vsel %vm70_vm0, %v169_v3, %v171_v2 }
 0x207   :  { %v175_v5 = vsel %vm73_vm2, %v172_v4, %v167_v1 }
 0x208   :  { %194 = vrot.lane.b32.xlu1 %v175_v5, %s801_s19  ;;  %186 = vrot.lane.b32.xlu2 %v175_v5, %s800_s1 }
 0x209   :  { %178 = vrot.lane.b32.xlu0 %v175_v5, %s799_s0 }
 0x20c   :  { %v185_v10 = vpop.permute.xlu1 %184 }
 0x20d   :  { %v193_v11 = vpop.permute.xlu0 %192 }
 0x210   :  { %200 = vrot.lane.b32.xlu2 %v166_v0, %s802_s20  ;;  %v290_v0 = vld.sshfl [vmem:[#allocation1] sm:$0xff pattern:$0x73625140] }
 0x211   :  { %202 = vrot.lane.b32.xlu0 %v175_v5, %s802_s20  ;;  %362 = vst [vmem:[#allocation1] ss:$4 sm:$0xff] %v830_v8 }
 0x262   :  { %v187_v12 = vpop.permute.xlu2 %186 }
 0x263   :  { %v189_v15 = vsel %vm101_vm1, %v187_v12, %v185_v10  ;;  %v188_v22 = vsel %vm101_vm1, %v185_v10, %v187_v12 }
 0x264   :  { %v191_v23 = vsel %vm73_vm2, 0.0, %v189_v15 }
 0x26a   :  { %v201_v28 = vpop.permute.xlu2 %200 }
 0x27a   :  { %v195_v13 = vpop.permute.xlu1 %194 }
 0x27b   :  { %v179_v14 = vpop.permute.xlu0 %178  ;;  %v196_v21 = vsel %vm115_vm3, %v193_v11, %v195_v13  ;;  %v197_v24 = vsel %vm115_vm3, %v195_v13, %v193_v11 }
 0x27c   :  { %v181_v16 = vsel %vm70_vm0, %v179_v14, %v177_v9  ;;  %v180_v19 = vsel %vm70_vm0, %v177_v9, %v179_v14  ;;  %v199_v27 = vsel %vm864_vm5, 0.0, %v196_v21  ;;  %v198_v29 = vsel %vm860_vm4, 0.0, %v197_v24 }
 0x27d   :  { %v182_v20 = vsel %vm70_vm0, 0.0, %v181_v16  ;;  %v209_v26 = vadd.f32 %v191_v23, %v180_v19 }
 0x27e   :  { %v208_v25 = vadd.f32 %v188_v22, %v182_v20 }
 0x27f   :  { %v211_v33 = vadd.f32 %v209_v26, %v199_v27 }
 0x280   :  { %v210_v34 = vadd.f32 %v208_v25, %v198_v29 }
 0x283   :  { %v203_v32 = vpop.permute.xlu0 %202 }
 0x284   :  { %v204_v35 = vsel %vm129_vm6, %v201_v28, %v203_v32  ;;  %v205_v38 = vsel %vm129_vm6, %v203_v32, %v201_v28 }
 0x285   :  { %v206_v39 = vsel %vm873_vm7, 0.0, %v204_v35  ;;  %v207_v40 = vsel %vm877_vm8, 0.0, %v205_v38 }
 0x286   :  { %v212_v41 = vadd.f32 %v210_v34, %v206_v39  ;;  %v213_v42 = vadd.f32 %v211_v33, %v207_v40 }
 0x288   :  { %v214_v43 = vmul.f32 0.25, %v212_v41  ;;  %v215_v44 = vmul.f32 0.25, %v213_v42 }
 0x28a   :  { %v222_v45 = vsub.f32 %v215_v44, %v218_v6  ;;  %v221_v46 = vsub.f32 %v214_v43, %v217_v7 }
 0x28c   :  { %v224_v47 = vsel %vm877_vm8, 0.0, %v222_v45  ;;  %v223_v48 = vsel %vm873_vm7, 0.0, %v221_v46 }
 0x28d   :  { %227 = vrot.lane.b32.xlu2 %v224_v47, %s800_s1  ;;  %225 = vrot.lane.b32.xlu1 %v223_v48, %s800_s1 }
 0x295   :  { %235 = vrot.lane.b32.xlu1 %v224_v47, %s802_s20 }
 0x2e7   :  { %v228_v49 = vpop.permute.xlu2 %227 }
 0x2ff   :  { %v226_v50 = vpop.permute.xlu1 %225 }
 0x300   :  { %v229_v51 = vsel %vm101_vm1, %v226_v50, %v228_v49 }
 0x301   :  { %v231_v52 = vsel %vm70_vm0, %v229_v51, %v223_v48 }
 0x302   :  { %233 = vrot.lane.b32.xlu0 %v231_v52, %s802_s20 }
 0x307   :  { %v236_v53 = vpop.permute.xlu1 %235 }
 0x374   :  { %v234_v54 = vpop.permute.xlu0 %233 }
 0x375   :  { %v237_v55 = vsel %vm129_vm6, %v234_v54, %v236_v53  ;;  %v238_v56 = vsel %vm129_vm6, %v236_v53, %v234_v54 }
 0x376   :  { %v239_v57 = vsel %vm860_vm4, %v237_v55, %v231_v52  ;;  %v240_v58 = vsel %vm864_vm5, %v238_v56, %v224_v47  ;;  %v364_v56 = vld.sshfl [vmem:[#allocation1 + $0x8] sm:$0xff pattern:$0x73625140] }
 0x377   :  { %243 = vrot.lane.b32.xlu0 %v240_v58, %s799_s0  ;;  %249 = vrot.lane.b32.xlu1 %v239_v57, %s799_s0 }
 0x378   :  { %241 = vrot.lane.b32.xlu2 %v239_v57, %s799_s0 }
 0x37f   :  { %257 = vrot.lane.b32.xlu0 %v239_v57, %s800_s1 }
 0x380   :  { %265 = vrot.lane.b32.xlu2 %v239_v57, %s801_s19 }
 0x3d2   :  { %v242_v59 = vpop.permute.xlu2 %241 }
 0x3da   :  { %v266_v1 = vpop.permute.xlu2 %265 }
 0x3e9   :  { %v244_v60 = vpop.permute.xlu0 %243  ;;  %v250_v2 = vpop.permute.xlu1 %249 }
 0x3ea   :  { %v245_v61 = vsel %vm70_vm0, %v242_v59, %v244_v60 }
 0x3eb   :  { %v248_v62 = vsel %vm73_vm2, %v245_v61, %v240_v58 }
 0x3ec   :  { %267 = vrot.lane.b32.xlu0 %v248_v62, %s801_s19  ;;  %259 = vrot.lane.b32.xlu1 %v248_v62, %s800_s1 }
 0x3ed   :  { %251 = vrot.lane.b32.xlu2 %v248_v62, %s799_s0 }
 0x3f1   :  { %v258_v3 = vpop.permute.xlu0 %257 }
 0x3f4   :  { %273 = vrot.lane.b32.xlu1 %v239_v57, %s802_s20  ;;  %v363_v57 = vld.sshfl [vmem:[#allocation1] sm:$0xff pattern:$0x73625140] }
 0x3f5   :  { %275 = vrot.lane.b32.xlu2 %v248_v62, %s802_s20  ;;  %435 = vst [vmem:[#allocation1] ss:$4 sm:$0xff] %v830_v8 }
 0x447   :  { %v252_v4 = vpop.permute.xlu2 %251 }
 0x448   :  { %v254_v7 = vsel %vm70_vm0, %v252_v4, %v250_v2  ;;  %v253_v13 = vsel %vm70_vm0, %v250_v2, %v252_v4 }
 0x449   :  { %v255_v14 = vsel %vm70_vm0, 0.0, %v254_v7 }
 0x44f   :  { %v276_v21 = vpop.permute.xlu2 %275 }
 0x45e   :  { %v268_v5 = vpop.permute.xlu0 %267  ;;  %v260_v6 = vpop.permute.xlu1 %259 }
 0x45f   :  { %v262_v9 = vsel %vm101_vm1, %v260_v6, %v258_v3  ;;  %v261_v10 = vsel %vm101_vm1, %v258_v3, %v260_v6  ;;  %v270_v12 = vsel %vm115_vm3, %v268_v5, %v266_v1  ;;  %v269_v15 = vsel %vm115_vm3, %v266_v1, %v268_v5 }
 0x460   :  { %v264_v11 = vsel %vm73_vm2, 0.0, %v262_v9  ;;  %v281_v16 = vadd.f32 %v261_v10, %v255_v14  ;;  %v271_v20 = vsel %vm860_vm4, 0.0, %v270_v12  ;;  %v272_v22 = vsel %vm864_vm5, 0.0, %v269_v15 }
 0x461   :  { %v282_v19 = vadd.f32 %v264_v11, %v253_v13 }
 0x462   :  { %v283_v24 = vadd.f32 %v281_v16, %v271_v20 }
 0x463   :  { %v284_v27 = vadd.f32 %v282_v19, %v272_v22 }
 0x466   :  { %v274_v23 = vpop.permute.xlu1 %273 }
 0x467   :  { %v277_v25 = vsel %vm129_vm6, %v274_v23, %v276_v21  ;;  %v278_v26 = vsel %vm129_vm6, %v276_v21, %v274_v23 }
 0x468   :  { %v279_v28 = vsel %vm873_vm7, 0.0, %v277_v25  ;;  %v280_v29 = vsel %vm877_vm8, 0.0, %v278_v26 }
 0x469   :  { %v285_v32 = vadd.f32 %v283_v24, %v279_v28  ;;  %v286_v33 = vadd.f32 %v284_v27, %v280_v29 }
 0x46b   :  { %v287_v34 = vmul.f32 0.25, %v285_v32  ;;  %v288_v35 = vmul.f32 0.25, %v286_v33 }
 0x46d   :  { %v295_v38 = vsub.f32 %v288_v35, %v291_v63  ;;  %v294_v39 = vsub.f32 %v287_v34, %v290_v0 }
 0x46f   :  { %v297_v40 = vsel %vm877_vm8, 0.0, %v295_v38  ;;  %v296_v41 = vsel %vm873_vm7, 0.0, %v294_v39 }
 0x470   :  { %300 = vrot.lane.b32.xlu1 %v297_v40, %s800_s1  ;;  %298 = vrot.lane.b32.xlu0 %v296_v41, %s800_s1 }
 0x478   :  { %308 = vrot.lane.b32.xlu0 %v297_v40, %s802_s20 }
 0x4e2   :  { %v301_v42 = vpop.permute.xlu1 %300  ;;  %v299_v43 = vpop.permute.xlu0 %298 }
 0x4e3   :  { %v302_v44 = vsel %vm101_vm1, %v299_v43, %v301_v42 }
 0x4e4   :  { %v304_v45 = vsel %vm70_vm0, %v302_v44, %v296_v41 }
 0x4e5   :  { %306 = vrot.lane.b32.xlu2 %v304_v45, %s802_s20 }
 0x4ea   :  { %v309_v46 = vpop.permute.xlu0 %308 }
 0x53f   :  { %v307_v47 = vpop.permute.xlu2 %306 }
 0x540   :  { %v310_v48 = vsel %vm129_vm6, %v307_v47, %v309_v46  ;;  %v311_v49 = vsel %vm129_vm6, %v309_v46, %v307_v47 }
 0x541   :  { %v312_v50 = vsel %vm860_vm4, %v310_v48, %v304_v45  ;;  %v313_v51 = vsel %vm864_vm5, %v311_v49, %v297_v40  ;;  %v437_v49 = vld.sshfl [vmem:[#allocation1 + $0x8] sm:$0xff pattern:$0x73625140] }
 0x542   :  { %316 = vrot.lane.b32.xlu2 %v313_v51, %s799_s0  ;;  %322 = vrot.lane.b32.xlu0 %v312_v50, %s799_s0 }
 0x543   :  { %314 = vrot.lane.b32.xlu1 %v312_v50, %s799_s0 }
 0x54a   :  { %330 = vrot.lane.b32.xlu2 %v312_v50, %s800_s1 }
 0x54b   :  { %338 = vrot.lane.b32.xlu1 %v312_v50, %s801_s19 }
 0x59c   :  { %v317_v52 = vpop.permute.xlu2 %316 }
 0x5a4   :  { %v331_v60 = vpop.permute.xlu2 %330 }
 0x5b4   :  { %v323_v58 = vpop.permute.xlu0 %322 }
 0x5b5   :  { %v315_v53 = vpop.permute.xlu1 %314 }
 0x5b6   :  { %v318_v54 = vsel %vm70_vm0, %v315_v53, %v317_v52 }
 0x5b7   :  { %v321_v55 = vsel %vm73_vm2, %v318_v54, %v313_v51 }
 0x5b8   :  { %340 = vrot.lane.b32.xlu2 %v321_v55, %s801_s19  ;;  %332 = vrot.lane.b32.xlu0 %v321_v55, %s800_s1 }
 0x5b9   :  { %324 = vrot.lane.b32.xlu1 %v321_v55, %s799_s0 }
 0x5bd   :  { %v339_v59 = vpop.permute.xlu1 %338 }
 0x5c0   :  { %346 = vrot.lane.b32.xlu0 %v312_v50, %s802_s20  ;;  %v436_v50 = vld.sshfl [vmem:[#allocation1] sm:$0xff pattern:$0x73625140] }
 0x5c1   :  { %348 = vrot.lane.b32.xlu1 %v321_v55, %s802_s20  ;;  %508 = vst [vmem:[#allocation1] ss:$4 sm:$0xff] %v830_v8 }
 0x612   :  { %v341_v1 = vpop.permute.xlu2 %340 }
 0x613   :  { %v342_v6 = vsel %vm115_vm3, %v339_v59, %v341_v1  ;;  %v343_v7 = vsel %vm115_vm3, %v341_v1, %v339_v59 }
 0x614   :  { %v344_v12 = vsel %vm860_vm4, 0.0, %v343_v7  ;;  %v345_v13 = vsel %vm864_vm5, 0.0, %v342_v6 }
 0x62a   :  { %v333_v61 = vpop.permute.xlu0 %332 }
 0x62b   :  { %v335_v62 = vsel %vm101_vm1, %v333_v61, %v331_v60  ;;  %v325_v63 = vpop.permute.xlu1 %324  ;;  %v334_v2 = vsel %vm101_vm1, %v331_v60, %v333_v61 }
 0x62c   :  { %v327_v0 = vsel %vm70_vm0, %v325_v63, %v323_v58  ;;  %v337_v3 = vsel %vm73_vm2, 0.0, %v335_v62  ;;  %v326_v4 = vsel %vm70_vm0, %v323_v58, %v325_v63 }
 0x62d   :  { %v328_v5 = vsel %vm70_vm0, 0.0, %v327_v0  ;;  %v355_v10 = vadd.f32 %v337_v3, %v326_v4 }
 0x62e   :  { %v354_v9 = vadd.f32 %v334_v2, %v328_v5 }
 0x62f   :  { %v357_v15 = vadd.f32 %v355_v10, %v345_v13 }
 0x630   :  { %v356_v16 = vadd.f32 %v354_v9, %v344_v12 }
 0x632   :  { %v347_v11 = vpop.permute.xlu0 %346 }
 0x633   :  { %v349_v14 = vpop.permute.xlu1 %348 }
 0x634   :  { %v350_v19 = vsel %vm129_vm6, %v347_v11, %v349_v14  ;;  %v351_v20 = vsel %vm129_vm6, %v349_v14, %v347_v11 }
 0x635   :  { %v352_v21 = vsel %vm873_vm7, 0.0, %v350_v19  ;;  %v353_v22 = vsel %vm877_vm8, 0.0, %v351_v20 }
 0x636   :  { %v358_v23 = vadd.f32 %v356_v16, %v352_v21  ;;  %v359_v24 = vadd.f32 %v357_v15, %v353_v22 }
 0x638   :  { %v360_v25 = vmul.f32 0.25, %v358_v23  ;;  %v361_v26 = vmul.f32 0.25, %v359_v24 }
 0x63a   :  { %v368_v27 = vsub.f32 %v361_v26, %v364_v56  ;;  %v367_v28 = vsub.f32 %v360_v25, %v363_v57 }
 0x63c   :  { %v370_v29 = vsel %vm877_vm8, 0.0, %v368_v27  ;;  %v369_v32 = vsel %vm873_vm7, 0.0, %v367_v28 }
 0x63d   :  { %373 = vrot.lane.b32.xlu0 %v370_v29, %s800_s1  ;;  %371 = vrot.lane.b32.xlu2 %v369_v32, %s800_s1 }
 0x645   :  { %381 = vrot.lane.b32.xlu2 %v370_v29, %s802_s20 }
 0x697   :  { %v372_v33 = vpop.permute.xlu2 %371 }
 0x69f   :  { %v382_v39 = vpop.permute.xlu2 %381 }
 0x6af   :  { %v374_v34 = vpop.permute.xlu0 %373 }
 0x6b0   :  { %v375_v35 = vsel %vm101_vm1, %v372_v33, %v374_v34 }
 0x6b1   :  { %v377_v38 = vsel %vm70_vm0, %v375_v35, %v369_v32 }
 0x6b2   :  { %379 = vrot.lane.b32.xlu1 %v377_v38, %s802_s20 }
 0x724   :  { %v380_v40 = vpop.permute.xlu1 %379 }
 0x725   :  { %v383_v41 = vsel %vm129_vm6, %v380_v40, %v382_v39  ;;  %v384_v42 = vsel %vm129_vm6, %v382_v39, %v380_v40 }
 0x726   :  { %v385_v43 = vsel %vm860_vm4, %v383_v41, %v377_v38  ;;  %v386_v44 = vsel %vm864_vm5, %v384_v42, %v370_v29  ;;  %v510_v42 = vld.sshfl [vmem:[#allocation1 + $0x8] sm:$0xff pattern:$0x73625140] }
 0x727   :  { %389 = vrot.lane.b32.xlu1 %v386_v44, %s799_s0  ;;  %395 = vrot.lane.b32.xlu2 %v385_v43, %s799_s0 }
 0x728   :  { %387 = vrot.lane.b32.xlu0 %v385_v43, %s799_s0 }
 0x72f   :  { %403 = vrot.lane.b32.xlu1 %v385_v43, %s800_s1 }
 0x730   :  { %411 = vrot.lane.b32.xlu0 %v385_v43, %s801_s19 }
 0x781   :  { %v396_v51 = vpop.permute.xlu2 %395 }
 0x799   :  { %v390_v45 = vpop.permute.xlu1 %389 }
 0x79a   :  { %v388_v46 = vpop.permute.xlu0 %387 }
 0x79b   :  { %v391_v47 = vsel %vm70_vm0, %v388_v46, %v390_v45 }
 0x79c   :  { %v394_v48 = vsel %vm73_vm2, %v391_v47, %v386_v44 }
 0x79d   :  { %413 = vrot.lane.b32.xlu1 %v394_v48, %s801_s19  ;;  %405 = vrot.lane.b32.xlu2 %v394_v48, %s800_s1 }
 0x79e   :  { %397 = vrot.lane.b32.xlu0 %v394_v48, %s799_s0 }
 0x7a1   :  { %v404_v52 = vpop.permute.xlu1 %403 }
 0x7a2   :  { %v412_v53 = vpop.permute.xlu0 %411 }
 0x7a5   :  { %419 = vrot.lane.b32.xlu2 %v385_v43, %s802_s20  ;;  %v509_v43 = vld.sshfl [vmem:[#allocation1] sm:$0xff pattern:$0x73625140] }
 0x7a6   :  { %421 = vrot.lane.b32.xlu0 %v394_v48, %s802_s20  ;;  %581 = vst [vmem:[#allocation1] ss:$4 sm:$0xff] %v830_v8 }
 0x7f7   :  { %v406_v54 = vpop.permute.xlu2 %405 }
 0x7f8   :  { %v408_v57 = vsel %vm101_vm1, %v406_v54, %v404_v52  ;;  %v407_v62 = vsel %vm101_vm1, %v404_v52, %v406_v54 }
 0x7f9   :  { %v410_v63 = vsel %vm73_vm2, 0.0, %v408_v57 }
 0x7ff   :  { %v420_v4 = vpop.permute.xlu2 %419 }
 0x80f   :  { %v414_v55 = vpop.permute.xlu1 %413 }
 0x810   :  { %v398_v56 = vpop.permute.xlu0 %397  ;;  %v415_v61 = vsel %vm115_vm3, %v412_v53, %v414_v55  ;;  %v416_v0 = vsel %vm115_vm3, %v414_v55, %v412_v53 }
 0x811   :  { %v400_v58 = vsel %vm70_vm0, %v398_v56, %v396_v51  ;;  %v399_v59 = vsel %vm70_vm0, %v396_v51, %v398_v56  ;;  %v418_v3 = vsel %vm864_vm5, 0.0, %v415_v61  ;;  %v417_v5 = vsel %vm860_vm4, 0.0, %v416_v0 }
 0x812   :  { %v401_v60 = vsel %vm70_vm0, 0.0, %v400_v58  ;;  %v428_v2 = vadd.f32 %v410_v63, %v399_v59 }
 0x813   :  { %v427_v1 = vadd.f32 %v407_v62, %v401_v60 }
 0x814   :  { %v430_v7 = vadd.f32 %v428_v2, %v418_v3 }
 0x815   :  { %v429_v9 = vadd.f32 %v427_v1, %v417_v5 }
 0x818   :  { %v422_v6 = vpop.permute.xlu0 %421 }
 0x819   :  { %v423_v10 = vsel %vm129_vm6, %v420_v4, %v422_v6  ;;  %v424_v11 = vsel %vm129_vm6, %v422_v6, %v420_v4 }
 0x81a   :  { %v425_v12 = vsel %vm873_vm7, 0.0, %v423_v10  ;;  %v426_v13 = vsel %vm877_vm8, 0.0, %v424_v11 }
 0x81b   :  { %v431_v14 = vadd.f32 %v429_v9, %v425_v12  ;;  %v432_v15 = vadd.f32 %v430_v7, %v426_v13 }
 0x81d   :  { %v433_v16 = vmul.f32 0.25, %v431_v14  ;;  %v434_v19 = vmul.f32 0.25, %v432_v15 }
 0x81f   :  { %v441_v20 = vsub.f32 %v434_v19, %v437_v49  ;;  %v440_v21 = vsub.f32 %v433_v16, %v436_v50 }
 0x821   :  { %v443_v22 = vsel %vm877_vm8, 0.0, %v441_v20  ;;  %v442_v23 = vsel %vm873_vm7, 0.0, %v440_v21 }
 0x822   :  { %446 = vrot.lane.b32.xlu2 %v443_v22, %s800_s1  ;;  %444 = vrot.lane.b32.xlu1 %v442_v23, %s800_s1 }
 0x82a   :  { %454 = vrot.lane.b32.xlu1 %v443_v22, %s802_s20 }
 0x87c   :  { %v447_v24 = vpop.permute.xlu2 %446 }
 0x894   :  { %v445_v25 = vpop.permute.xlu1 %444 }
 0x895   :  { %v448_v26 = vsel %vm101_vm1, %v445_v25, %v447_v24 }
 0x896   :  { %v450_v27 = vsel %vm70_vm0, %v448_v26, %v442_v23 }
 0x897   :  { %452 = vrot.lane.b32.xlu0 %v450_v27, %s802_s20 }
 0x89c   :  { %v455_v28 = vpop.permute.xlu1 %454 }
 0x909   :  { %v453_v29 = vpop.permute.xlu0 %452 }
 0x90a   :  { %v456_v32 = vsel %vm129_vm6, %v453_v29, %v455_v28  ;;  %v457_v33 = vsel %vm129_vm6, %v455_v28, %v453_v29 }
 0x90b   :  { %v458_v34 = vsel %vm860_vm4, %v456_v32, %v450_v27  ;;  %v459_v35 = vsel %vm864_vm5, %v457_v33, %v443_v22  ;;  %v583_v33 = vld.sshfl [vmem:[#allocation1 + $0x8] sm:$0xff pattern:$0x73625140] }
 0x90c   :  { %462 = vrot.lane.b32.xlu0 %v459_v35, %s799_s0  ;;  %468 = vrot.lane.b32.xlu1 %v458_v34, %s799_s0 }
 0x90d   :  { %460 = vrot.lane.b32.xlu2 %v458_v34, %s799_s0 }
 0x914   :  { %476 = vrot.lane.b32.xlu0 %v458_v34, %s800_s1 }
 0x915   :  { %484 = vrot.lane.b32.xlu2 %v458_v34, %s801_s19 }
 0x967   :  { %v461_v38 = vpop.permute.xlu2 %460 }
 0x96f   :  { %v485_v44 = vpop.permute.xlu2 %484 }
 0x97e   :  { %v463_v39 = vpop.permute.xlu0 %462  ;;  %v469_v45 = vpop.permute.xlu1 %468 }
 0x97f   :  { %v464_v40 = vsel %vm70_vm0, %v461_v38, %v463_v39 }
 0x980   :  { %v467_v41 = vsel %vm73_vm2, %v464_v40, %v459_v35 }
 0x981   :  { %486 = vrot.lane.b32.xlu0 %v467_v41, %s801_s19  ;;  %478 = vrot.lane.b32.xlu1 %v467_v41, %s800_s1 }
 0x982   :  { %470 = vrot.lane.b32.xlu2 %v467_v41, %s799_s0 }
 0x986   :  { %v477_v46 = vpop.permute.xlu0 %476 }
 0x989   :  { %492 = vrot.lane.b32.xlu1 %v458_v34, %s802_s20  ;;  %v582_v34 = vld.sshfl [vmem:[#allocation1] sm:$0xff pattern:$0x73625140] }
 0x98a   :  { %494 = vrot.lane.b32.xlu2 %v467_v41, %s802_s20  ;;  %654 = vst [vmem:[#allocation1] ss:$4 sm:$0xff] %v830_v8 }
 0x9dc   :  { %v471_v47 = vpop.permute.xlu2 %470 }
 0x9dd   :  { %v473_v50 = vsel %vm70_vm0, %v471_v47, %v469_v45  ;;  %v472_v55 = vsel %vm70_vm0, %v469_v45, %v471_v47 }
 0x9de   :  { %v474_v56 = vsel %vm70_vm0, 0.0, %v473_v50 }
 0x9e4   :  { %v495_v61 = vpop.permute.xlu2 %494 }
 0x9f3   :  { %v487_v48 = vpop.permute.xlu0 %486  ;;  %v479_v49 = vpop.permute.xlu1 %478 }
 0x9f4   :  { %v481_v51 = vsel %vm101_vm1, %v479_v49, %v477_v46  ;;  %v480_v52 = vsel %vm101_vm1, %v477_v46, %v479_v49  ;;  %v489_v54 = vsel %vm115_vm3, %v487_v48, %v485_v44  ;;  %v488_v57 = vsel %vm115_vm3, %v485_v44, %v487_v48 }
 0x9f5   :  { %v483_v53 = vsel %vm73_vm2, 0.0, %v481_v51  ;;  %v500_v58 = vadd.f32 %v480_v52, %v474_v56  ;;  %v490_v60 = vsel %vm860_vm4, 0.0, %v489_v54  ;;  %v491_v62 = vsel %vm864_vm5, 0.0, %v488_v57 }
 0x9f6   :  { %v501_v59 = vadd.f32 %v483_v53, %v472_v55 }
 0x9f7   :  { %v502_v0 = vadd.f32 %v500_v58, %v490_v60 }
 0x9f8   :  { %v503_v3 = vadd.f32 %v501_v59, %v491_v62 }
 0x9fb   :  { %v493_v63 = vpop.permute.xlu1 %492 }
 0x9fc   :  { %v496_v1 = vsel %vm129_vm6, %v493_v63, %v495_v61  ;;  %v497_v2 = vsel %vm129_vm6, %v495_v61, %v493_v63 }
 0x9fd   :  { %v498_v4 = vsel %vm873_vm7, 0.0, %v496_v1  ;;  %v499_v5 = vsel %vm877_vm8, 0.0, %v497_v2 }
 0x9fe   :  { %v504_v6 = vadd.f32 %v502_v0, %v498_v4  ;;  %v505_v7 = vadd.f32 %v503_v3, %v499_v5 }
 0xa00   :  { %v506_v9 = vmul.f32 0.25, %v504_v6  ;;  %v507_v10 = vmul.f32 0.25, %v505_v7 }
 0xa02   :  { %v514_v11 = vsub.f32 %v507_v10, %v510_v42  ;;  %v513_v12 = vsub.f32 %v506_v9, %v509_v43 }
 0xa04   :  { %v516_v13 = vsel %vm877_vm8, 0.0, %v514_v11  ;;  %v515_v14 = vsel %vm873_vm7, 0.0, %v513_v12 }
 0xa05   :  { %519 = vrot.lane.b32.xlu1 %v516_v13, %s800_s1  ;;  %517 = vrot.lane.b32.xlu0 %v515_v14, %s800_s1 }
 0xa0d   :  { %527 = vrot.lane.b32.xlu0 %v516_v13, %s802_s20 }
 0xa77   :  { %v520_v15 = vpop.permute.xlu1 %519  ;;  %v518_v16 = vpop.permute.xlu0 %517 }
 0xa78   :  { %v521_v19 = vsel %vm101_vm1, %v518_v16, %v520_v15 }
 0xa79   :  { %v523_v20 = vsel %vm70_vm0, %v521_v19, %v515_v14 }
 0xa7a   :  { %525 = vrot.lane.b32.xlu2 %v523_v20, %s802_s20 }
 0xa7f   :  { %v528_v21 = vpop.permute.xlu0 %527 }
 0xad4   :  { %v526_v22 = vpop.permute.xlu2 %525 }
 0xad5   :  { %v529_v23 = vsel %vm129_vm6, %v526_v22, %v528_v21  ;;  %v530_v24 = vsel %vm129_vm6, %v528_v21, %v526_v22 }
 0xad6   :  { %v531_v25 = vsel %vm860_vm4, %v529_v23, %v523_v20  ;;  %v532_v26 = vsel %vm864_vm5, %v530_v24, %v516_v13 }
 0xad7   :  { %535 = vrot.lane.b32.xlu2 %v532_v26, %s799_s0  ;;  %541 = vrot.lane.b32.xlu0 %v531_v25, %s799_s0 }
 0xad8   :  { %533 = vrot.lane.b32.xlu1 %v531_v25, %s799_s0 }
 0xadf   :  { %549 = vrot.lane.b32.xlu2 %v531_v25, %s800_s1 }
 0xae0   :  { %557 = vrot.lane.b32.xlu1 %v531_v25, %s801_s19 }
 0xb31   :  { %v536_v27 = vpop.permute.xlu2 %535 }
 0xb39   :  { %v550_v39 = vpop.permute.xlu2 %549 }
 0xb49   :  { %v542_v35 = vpop.permute.xlu0 %541 }
 0xb4a   :  { %v534_v28 = vpop.permute.xlu1 %533 }
 0xb4b   :  { %v537_v29 = vsel %vm70_vm0, %v534_v28, %v536_v27 }
 0xb4c   :  { %v540_v32 = vsel %vm73_vm2, %v537_v29, %v532_v26 }
 0xb4d   :  { %559 = vrot.lane.b32.xlu2 %v540_v32, %s801_s19  ;;  %551 = vrot.lane.b32.xlu0 %v540_v32, %s800_s1 }
 0xb4e   :  { %543 = vrot.lane.b32.xlu1 %v540_v32, %s799_s0 }
 0xb52   :  { %v558_v38 = vpop.permute.xlu1 %557 }
 0xb55   :  { %565 = vrot.lane.b32.xlu0 %v531_v25, %s802_s20 }
 0xb56   :  { %567 = vrot.lane.b32.xlu1 %v540_v32, %s802_s20 }
 0xba7   :  { %v560_v44 = vpop.permute.xlu2 %559 }
 0xba8   :  { %v561_v48 = vsel %vm115_vm3, %v558_v38, %v560_v44  ;;  %v562_v49 = vsel %vm115_vm3, %v560_v44, %v558_v38 }
 0xba9   :  { %v563_v53 = vsel %vm860_vm4, 0.0, %v562_v49  ;;  %v564_v54 = vsel %vm864_vm5, 0.0, %v561_v48 }
 0xbbf   :  { %v552_v40 = vpop.permute.xlu0 %551 }
 0xbc0   :  { %v554_v41 = vsel %vm101_vm1, %v552_v40, %v550_v39  ;;  %v544_v42 = vpop.permute.xlu1 %543  ;;  %v553_v45 = vsel %vm101_vm1, %v550_v39, %v552_v40 }
 0xbc1   :  { %v546_v43 = vsel %vm70_vm0, %v544_v42, %v542_v35  ;;  %v556_v46 = vsel %vm73_vm2, 0.0, %v554_v41  ;;  %v545_v8 = vsel %vm70_vm0, %v542_v35, %v544_v42 }
 0xbc2   :  { %v547_v47 = vsel %vm70_vm0, 0.0, %v546_v43  ;;  %v574_v51 = vadd.f32 %v556_v46, %v545_v8 }
 0xbc3   :  { %v573_v50 = vadd.f32 %v553_v45, %v547_v47 }
 0xbc4   :  { %v576_v56 = vadd.f32 %v574_v51, %v564_v54  ;;  %v656_v54 = vld.sshfl [vmem:[#allocation1 + $0x8] sm:$0xff pattern:$0x73625140] }
 0xbc5   :  { %v575_v57 = vadd.f32 %v573_v50, %v563_v53 }
 0xbc7   :  { %v566_v52 = vpop.permute.xlu0 %565 }
 0xbc8   :  { %v568_v55 = vpop.permute.xlu1 %567 }
 0xbc9   :  { %v569_v58 = vsel %vm129_vm6, %v566_v52, %v568_v55  ;;  %v570_v59 = vsel %vm129_vm6, %v568_v55, %v566_v52  ;;  %v655_v55 = vld.sshfl [vmem:[#allocation1] sm:$0xff pattern:$0x73625140] }
 0xbca   :  { %v571_v60 = vsel %vm873_vm7, 0.0, %v569_v58  ;;  %v572_v61 = vsel %vm877_vm8, 0.0, %v570_v59 }
 0xbcb   :  { %v577_v62 = vadd.f32 %v575_v57, %v571_v60  ;;  %v578_v63 = vadd.f32 %v576_v56, %v572_v61 }
 0xbcd   :  { %v579_v0 = vmul.f32 0.25, %v577_v62  ;;  %v580_v1 = vmul.f32 0.25, %v578_v63 }
 0xbcf   :  { %v587_v2 = vsub.f32 %v580_v1, %v583_v33  ;;  %v586_v3 = vsub.f32 %v579_v0, %v582_v34 }
 0xbd1   :  { %v589_v4 = vsel %vm877_vm8, 0.0, %v587_v2  ;;  %v588_v5 = vsel %vm873_vm7, 0.0, %v586_v3 }
 0xbd2   :  { %592 = vrot.lane.b32.xlu0 %v589_v4, %s800_s1  ;;  %590 = vrot.lane.b32.xlu2 %v588_v5, %s800_s1 }
 0xbda   :  { %600 = vrot.lane.b32.xlu2 %v589_v4, %s802_s20 }
 0xc2c   :  { %v591_v6 = vpop.permute.xlu2 %590 }
 0xc34   :  { %v601_v11 = vpop.permute.xlu2 %600 }
 0xc44   :  { %v593_v7 = vpop.permute.xlu0 %592 }
 0xc45   :  { %v594_v9 = vsel %vm101_vm1, %v591_v6, %v593_v7 }
 0xc46   :  { %v596_v10 = vsel %vm70_vm0, %v594_v9, %v588_v5 }
 0xc47   :  { %598 = vrot.lane.b32.xlu1 %v596_v10, %s802_s20 }
 0xcb9   :  { %v599_v12 = vpop.permute.xlu1 %598 }
 0xcba   :  { %v602_v13 = vsel %vm129_vm6, %v599_v12, %v601_v11  ;;  %v603_v14 = vsel %vm129_vm6, %v601_v11, %v599_v12 }
 0xcbb   :  { %v604_v15 = vsel %vm860_vm4, %v602_v13, %v596_v10  ;;  %v605_v16 = vsel %vm864_vm5, %v603_v14, %v589_v4 }
 0xcbc   :  { %608 = vrot.lane.b32.xlu1 %v605_v16, %s799_s0  ;;  %614 = vrot.lane.b32.xlu2 %v604_v15, %s799_s0 }
 0xcbd   :  { %606 = vrot.lane.b32.xlu0 %v604_v15, %s799_s0 }
 0xcc4   :  { %622 = vrot.lane.b32.xlu1 %v604_v15, %s800_s1 }
 0xcc5   :  { %630 = vrot.lane.b32.xlu0 %v604_v15, %s801_s19 }
 0xd16   :  { %v615_v23 = vpop.permute.xlu2 %614 }
 0xd2e   :  { %v609_v19 = vpop.permute.xlu1 %608 }
 0xd2f   :  { %v607_v20 = vpop.permute.xlu0 %606 }
 0xd30   :  { %v610_v21 = vsel %vm70_vm0, %v607_v20, %v609_v19 }
 0xd31   :  { %v613_v22 = vsel %vm73_vm2, %v610_v21, %v605_v16 }
 0xd32   :  { %632 = vrot.lane.b32.xlu1 %v613_v22, %s801_s19  ;;  %624 = vrot.lane.b32.xlu2 %v613_v22, %s800_s1 }
 0xd33   :  { %616 = vrot.lane.b32.xlu0 %v613_v22, %s799_s0 }
 0xd36   :  { %v623_v24 = vpop.permute.xlu1 %622 }
 0xd37   :  { %v631_v25 = vpop.permute.xlu0 %630 }
 0xd3a   :  { %638 = vrot.lane.b32.xlu2 %v604_v15, %s802_s20 }
 0xd3b   :  { %640 = vrot.lane.b32.xlu0 %v613_v22, %s802_s20 }
 0xd8c   :  { %v625_v26 = vpop.permute.xlu2 %624 }
 0xd8d   :  { %v627_v29 = vsel %vm101_vm1, %v625_v26, %v623_v24  ;;  %v626_v38 = vsel %vm101_vm1, %v623_v24, %v625_v26 }
 0xd8e   :  { %v629_v39 = vsel %vm73_vm2, 0.0, %v627_v29 }
 0xd94   :  { %v639_v44 = vpop.permute.xlu2 %638 }
 0xda4   :  { %v633_v27 = vpop.permute.xlu1 %632 }
 0xda5   :  { %v617_v28 = vpop.permute.xlu0 %616  ;;  %v634_v35 = vsel %vm115_vm3, %v631_v25, %v633_v27  ;;  %v635_v40 = vsel %vm115_vm3, %v633_v27, %v631_v25 }
 0xda6   :  { %v619_v32 = vsel %vm70_vm0, %v617_v28, %v615_v23  ;;  %v618_v33 = vsel %vm70_vm0, %v615_v23, %v617_v28  ;;  %v637_v43 = vsel %vm864_vm5, 0.0, %v634_v35  ;;  %v636_v45 = vsel %vm860_vm4, 0.0, %v635_v40 }
 0xda7   :  { %v620_v34 = vsel %vm70_vm0, 0.0, %v619_v32  ;;  %v647_v42 = vadd.f32 %v629_v39, %v618_v33 }
 0xda8   :  { %v646_v41 = vadd.f32 %v626_v38, %v620_v34 }
 0xda9   :  { %v649_v8 = vadd.f32 %v647_v42, %v637_v43 }
 0xdaa   :  { %v648_v47 = vadd.f32 %v646_v41, %v636_v45 }
 0xdad   :  { %v641_v46 = vpop.permute.xlu0 %640 }
 0xdae   :  { %v642_v48 = vsel %vm129_vm6, %v639_v44, %v641_v46  ;;  %v643_v49 = vsel %vm129_vm6, %v641_v46, %v639_v44 }
 0xdaf   :  { %v644_v50 = vsel %vm873_vm7, 0.0, %v642_v48  ;;  %v645_v51 = vsel %vm877_vm8, 0.0, %v643_v49 }
 0xdb0   :  { %v650_v52 = vadd.f32 %v648_v47, %v644_v50  ;;  %v651_v53 = vadd.f32 %v649_v8, %v645_v51 }
 0xdb2   :  { %v652_v56 = vmul.f32 0.25, %v650_v52  ;;  %v653_v57 = vmul.f32 0.25, %v651_v53 }
 0xdb4   :  { %v660_v58 = vsub.f32 %v653_v57, %v656_v54  ;;  %v659_v59 = vsub.f32 %v652_v56, %v655_v55 }
 0xdb6   :  { %v662_v60 = vsel %vm877_vm8, 0.0, %v660_v58  ;;  %v661_v61 = vsel %vm873_vm7, 0.0, %v659_v59 }
 0xdb7   :  { %665 = vrot.lane.b32.xlu2 %v662_v60, %s800_s1  ;;  %663 = vrot.lane.b32.xlu1 %v661_v61, %s800_s1 }
 0xdbf   :  { %673 = vrot.lane.b32.xlu1 %v662_v60, %s802_s20 }
 0xe11   :  { %v666_v62 = vpop.permute.xlu2 %665 }
 0xe29   :  { %v664_v63 = vpop.permute.xlu1 %663 }
 0xe2a   :  { %v667_v0 = vsel %vm101_vm1, %v664_v63, %v666_v62 }
 0xe2b   :  { %v669_v1 = vsel %vm70_vm0, %v667_v0, %v661_v61 }
 0xe2c   :  { %671 = vrot.lane.b32.xlu0 %v669_v1, %s802_s20 }
 0xe31   :  { %v674_v37 = vpop.permute.xlu1 %673 }
 0xe9e   :  { %v672_v2 = vpop.permute.xlu0 %671 }
 0xe9f   :  { %v675_v36 = vsel %vm129_vm6, %v672_v2, %v674_v37  ;;  %v676_v3 = vsel %vm129_vm6, %v674_v37, %v672_v2 }
 0xea0   :  { %v678_v4 = vsel %vm864_vm5, %v676_v3, %v662_v60  ;;  %v677_v5 = vsel %vm860_vm4, %v675_v36, %v669_v1 }
 0xea1   :  { %681 = vrot.lane.b32.xlu0 %v678_v4, %s799_s0  ;;  %679 = vrot.lane.b32.xlu2 %v677_v5, %s799_s0 }
 0xefb   :  { %v680_v6 = vpop.permute.xlu2 %679 }
 0xf13   :  { %v682_v7 = vpop.permute.xlu0 %681 }
 0xf14   :  { %v683_v9 = vsel %vm70_vm0, %v680_v6, %v682_v7 }
 0xf15   :  { %v686_v31 = vsel %vm73_vm2, %v683_v9, %v678_v4 }
 0xf16   :  { %v689_v30 = vrot.slane %v686_v31, 6 }
 0xf18   :  { %v691_v10 = vsel %vm690_vm9, %v677_v5, %v689_v30 }
 0xf19   :  { %693 = vst [vmem:[#allocation7] sm:$0xf] %v691_v10 }
 0xf1a   :  { %704 = dma.vmem_to_hbm [thread:$0]  %s700_s22, 64, %s702_s25, [#allocation4]  }
 0xf1b   :  { %795 = dma.done.wait [#allocation4], 64  }
 0xf1c   :  { %796 = vsyncadd [#allocation4], 4294967232 }
 0xf1d   :  { %709 = vsyncpa [#allocation3], 1 }
 0xf1e   :  { %710 = vsyncpa [#allocation6], 1 }
 0xf1f   :  { %711 = vsyncpa [#allocation4], 1 }

</bundles_post_ra>
